<compile_context>
chip_gen: v5e
topology: v5e:2x2
jax: 0.10.0
libtpu: 0.0.40
codegen_flags: <defaults>
</compile_context>

<pallas_src>
import jax
import jax.numpy as jnp
import numpy as np
from jax.experimental import pallas as pl
from jax.experimental.pallas import tpu as pltpu

BN_EPS = 1e-5
LANES = 128


def _conv_stats_kernel(p_ref, w_ref, conv_ref, stats_ref):
    """Pass 1: conv as one im2col matmul + per-tile BN partial sums.

    p_ref:     (TM, K)     bf16  im2col patches for this row tile
    w_ref:     (K, Cpad)   bf16  conv weights, Cout zero-padded to 128 lanes
    conv_ref:  (TM, Cpad)  f32   conv output tile (pre-BN)
    stats_ref: (8, Cpad)   f32   row 0 = per-channel sum, row 1 = sum of squares
    """
    acc = jnp.dot(p_ref[...], w_ref[...], preferred_element_type=jnp.float32)
    conv_ref[...] = acc

    s = jnp.sum(acc, axis=0, keepdims=True)          # (1, Cpad)
    sq = jnp.sum(acc * acc, axis=0, keepdims=True)   # (1, Cpad)
    row = jax.lax.broadcasted_iota(jnp.int32, (8, acc.shape[1]), 0)
    stats_ref[...] = jnp.where(row == 0, s, jnp.where(row == 1, sq, 0.0))


def _bn_relu_pool_kernel(z_ref, scale_ref, shift_ref, o_ref):
    """Pass 2: y = relu(conv * scale + shift); 1x2 max-pool as a lane-slice max.

    z_ref:     (TM, 2*Cpad) f32  conv tile; adjacent freq pair packed on lanes
    scale_ref: (1, 2*Cpad)  f32  gamma * rsqrt(var + eps), tiled twice on lanes
    shift_ref: (1, 2*Cpad)  f32  beta - mean * scale, tiled twice on lanes
    o_ref:     (TM, Cpad)   f32  pooled output tile
    """
    cpad = o_ref.shape[1]
    y = z_ref[...] * scale_ref[...] + shift_ref[...]
    y = jnp.maximum(y, 0.0)
    o_ref[...] = jnp.maximum(y[:, :cpad], y[:, cpad:])


def conv_block_forward(x_nchw, w_oihw, b_conv, gamma, beta, *, tm=128):
    """ConvBlock forward. x_nchw: (N, Cin, H, W) -> (N, Cout, H, W//2).

    tm = rows per grid tile (multiple of 8). Per step, double-buffered VMEM is
    ~2 * (tm*K*2 + tm*Cpad*4 [+ tm*2*Cpad*4 in pass 2]) bytes, so tm can be raised
    to several thousand rows and still sit far below v7x's 64 MiB per-TC VMEM.
    """
    # Conv bias cancels exactly under training-mode BatchNorm, so it is unused here.
    del b_conv
    N, Cin, H, W = x_nchw.shape
    Cout, _, KH, KW = w_oihw.shape
    ph, pw = (KH - 1) // 2, (KW - 1) // 2
    # TODO(synk): odd W (PyTorch MaxPool drops the last column) not handled by the
    # lane-packed pooling layout; require even W (true for the module's spectrogram use).
    assert W % 2 == 0, "ConvBlock Pallas kernel requires an even freq dimension"
    Wout = W // 2
    K = KH * KW * Cin
    Cpad = ((Cout + LANES - 1) // LANES) * LANES
    M = N * H * W

    # ---------------- XLA glue (HBM side): layout, pad, im2col, weight repack ---------
    x_nhwc = jnp.transpose(x_nchw, (0, 2, 3, 1))
    x_pad = jnp.pad(x_nhwc, ((0, 0), (ph, ph), (pw, pw), (0, 0)))
    cols = [x_pad[:, kh:kh + H, kw:kw + W, :]
            for kh in range(KH) for kw in range(KW)]
    patches = jnp.concatenate(cols, axis=-1).reshape(M, K).astype(jnp.bfloat16)

    w_mat = jnp.transpose(w_oihw, (2, 3, 1, 0)).reshape(K, Cout)  # (kh,kw,cin,cout)
    w_pad = jnp.zeros((K, Cpad), jnp.bfloat16).at[:, :Cout].set(
        w_mat.astype(jnp.bfloat16))

    # Pad rows so the grid tiles evenly; zero patch rows contribute 0 to both BN
    # partial sums, and we divide by the true count M, so statistics stay exact.
    m_pad = ((M + 2 * tm - 1) // (2 * tm)) * (2 * tm)
    patches = jnp.pad(patches, ((0, m_pad - M), (0, 0)))
    grid1 = m_pad // tm

    # ---------------- Pass 1: conv matmul + per-tile BN partials ----------------------
    conv_out, stats = pl.pallas_call(
        _conv_stats_kernel,
        out_shape=(
            jax.ShapeDtypeStruct((m_pad, Cpad), jnp.float32),
            jax.ShapeDtypeStruct((grid1 * 8, Cpad), jnp.float32),
        ),
        grid=(grid1,),
        in_specs=[
            pl.BlockSpec((tm, K), lambda i: (i, 0)),
            pl.BlockSpec((K, Cpad), lambda i: (0, 0)),   # weights stay resident
        ],
        out_specs=(
            pl.BlockSpec((tm, Cpad), lambda i: (i, 0)),
            pl.BlockSpec((8, Cpad), lambda i: (i, 0)),
        ),
        compiler_params=pltpu.CompilerParams(
            dimension_semantics=("parallel",),
            vmem_limit_bytes=32 * 1024 * 1024,
        ),
        cost_estimate=pl.CostEstimate(
            flops=2 * m_pad * K * Cpad,
            transcendentals=0,
            bytes_accessed=(m_pad * K * 2 + K * Cpad * 2
                            + m_pad * Cpad * 4 + grid1 * 8 * Cpad * 4),
        ),
    )(patches, w_pad)

    # ---------------- Tiny XLA reduce: global BN stats -> per-channel scale/shift -----
    st = stats.reshape(grid1, 8, Cpad)
    mean = jnp.sum(st[:, 0, :], axis=0) / M
    var = jnp.maximum(jnp.sum(st[:, 1, :], axis=0) / M - mean * mean, 0.0)
    inv = jax.lax.rsqrt(var + BN_EPS)
    gamma_p = jnp.zeros((Cpad,), jnp.float32).at[:Cout].set(gamma.astype(jnp.float32))
    beta_p = jnp.zeros((Cpad,), jnp.float32).at[:Cout].set(beta.astype(jnp.float32))
    scale_c = gamma_p * inv
    shift_c = beta_p - mean * scale_c
    scale2 = jnp.tile(scale_c, 2)[None, :]   # (1, 2*Cpad)
    shift2 = jnp.tile(shift_c, 2)[None, :]

    # ---------------- Pass 2: normalize + ReLU + 1x2 max-pool -------------------------
    rows2 = m_pad // 2
    grid2 = rows2 // tm
    z = conv_out.reshape(rows2, 2 * Cpad)    # free view: pairs adjacent W cols on lanes
    pooled = pl.pallas_call(
        _bn_relu_pool_kernel,
        out_shape=jax.ShapeDtypeStruct((rows2, Cpad), jnp.float32),
        grid=(grid2,),
        in_specs=[
            pl.BlockSpec((tm, 2 * Cpad), lambda i: (i, 0)),
            pl.BlockSpec((1, 2 * Cpad), lambda i: (0, 0)),
            pl.BlockSpec((1, 2 * Cpad), lambda i: (0, 0)),
        ],
        out_specs=pl.BlockSpec((tm, Cpad), lambda i: (i, 0)),
        compiler_params=pltpu.CompilerParams(
            dimension_semantics=("parallel",),
            vmem_limit_bytes=32 * 1024 * 1024,
        ),
        cost_estimate=pl.CostEstimate(
            flops=rows2 * 2 * Cpad * 4,
            transcendentals=0,
            bytes_accessed=rows2 * 2 * Cpad * 4 + rows2 * Cpad * 4 + 4 * Cpad * 4,
        ),
    )(z, scale2, shift2)

    out = pooled[:N * H * Wout, :Cout].reshape(N, H, Wout, Cout)
    return jnp.transpose(out, (0, 3, 1, 2)).astype(x_nchw.dtype)


def _reference(x_nchw, w_oihw, b_conv, gamma, beta):
    """Pure-JAX reference mirroring the PyTorch forward in training mode (keeps bias)."""
    conv = jax.lax.conv_general_dilated(
        x_nchw, w_oihw, window_strides=(1, 1), padding="SAME",
        dimension_numbers=("NCHW", "OIHW", "NCHW"),
        precision=jax.lax.Precision.HIGHEST,
    ) + b_conv.reshape(1, -1, 1, 1)
    mean = jnp.mean(conv, axis=(0, 2, 3), keepdims=True)
    var = jnp.mean((conv - mean) ** 2, axis=(0, 2, 3), keepdims=True)
    y = (conv - mean) * jax.lax.rsqrt(var + BN_EPS)
    y = y * gamma.reshape(1, -1, 1, 1) + beta.reshape(1, -1, 1, 1)
    y = jnp.maximum(y, 0.0)
    N, C, H, W = y.shape
    return jnp.max(y[:, :, :, : (W // 2) * 2].reshape(N, C, H, W // 2, 2), axis=-1)


if __name__ == "__main__":
    # Small shapes consistent with the module: x is (batch, in_channels, T, F).
    N, Cin, Cout, H, W = 2, 4, 8, 16, 16
    KH = KW = 3

    key = jax.random.PRNGKey(0)
    kx, kw, kb = jax.random.split(key, 3)

    x = jax.random.normal(kx, (N, Cin, H, W), dtype=jnp.float32)

    # PyTorch-style uniform init for conv; default gamma=1 / beta=0 for BatchNorm2d.
    fan_in = Cin * KH * KW
    bound = 1.0 / np.sqrt(fan_in)
    w_conv = jax.random.uniform(kw, (Cout, Cin, KH, KW), jnp.float32, -bound, bound)
    b_conv = jax.random.uniform(kb, (Cout,), jnp.float32, -bound, bound)
    gamma = jnp.ones((Cout,), jnp.float32)
    beta = jnp.zeros((Cout,), jnp.float32)

    out = conv_block_forward(x, w_conv, b_conv, gamma, beta)
    out = jax.block_until_ready(out)

    ref = jax.block_until_ready(_reference(x, w_conv, b_conv, gamma, beta))
    assert out.shape == (N, Cout, H, W // 2), out.shape
    np.testing.assert_allclose(np.asarray(out), np.asarray(ref), atol=2e-2, rtol=2e-2)

    print("KERNEL_OK")
</pallas_src>

<mosaic_0001>
module attributes {stable_mosaic.version = 11 : i64} {
  func.func @_conv_stats_kernel(%arg0: i32, %arg1: memref<128x36xbf16, #tpu.memory_space<vmem>>, %arg2: memref<36x128xbf16, #tpu.memory_space<vmem>>, %arg3: memref<128x128xf32, #tpu.memory_space<vmem>>, %arg4: memref<8x128xf32, #tpu.memory_space<vmem>>) attributes {dimension_semantics = [#tpu.dimension_semantics<parallel>], iteration_bounds = array<i64: 4>, scalar_prefetch = 0 : i64, scratch_operands = 0 : i64, tpu.core_type = #tpu.core_type<tc>, window_params = [{transform_indices = @transform_0, window_bounds = array<i64: 128, 36>}, {pipeline_mode = #tpu.pipeline_mode<synchronous>, transform_indices = @transform_1, window_bounds = array<i64: 36, 128>}, {transform_indices = @transform_2, window_bounds = array<i64: 128, 128>}, {transform_indices = @transform_3, window_bounds = array<i64: 8, 128>}]} {
    %c0 = arith.constant 0 : index
    %c0_0 = arith.constant 0 : index
    %0 = vector.load %arg1[%c0, %c0_0] : memref<128x36xbf16, #tpu.memory_space<vmem>>, vector<128x36xbf16>
    %c0_1 = arith.constant 0 : index
    %c0_2 = arith.constant 0 : index
    %1 = vector.load %arg2[%c0_1, %c0_2] : memref<36x128xbf16, #tpu.memory_space<vmem>>, vector<36x128xbf16>
    %cst = arith.constant dense<0.000000e+00> : vector<128x128xf32>
    %2 = tpu.matmul %0, %1, %cst {dimension_numbers = #tpu.dot_dimension_numbers<[1], [0], [0], [1], [0, 0, 1, 1], [], []>} : vector<128x36xbf16>, vector<36x128xbf16>, vector<128x128xf32> -> vector<128x128xf32>
    %c0_3 = arith.constant 0 : index
    %c0_4 = arith.constant 0 : index
    %3 = vector.load %arg3[%c0_3, %c0_4] : memref<128x128xf32, #tpu.memory_space<vmem>>, vector<128x128xf32>
    tpu.vector_store %arg3[%c0_3, %c0_4], %2 {strides = array<i32>} : memref<128x128xf32, #tpu.memory_space<vmem>>, vector<128x128xf32>,
    %cst_5 = arith.constant dense<0.000000e+00> : vector<128xf32>
    %4 = vector.multi_reduction <add>, %2, %cst_5 [0] : vector<128x128xf32> to vector<128xf32>
    %5 = vector.shape_cast %4 : vector<128xf32> to vector<1x128xf32>
    %6 = arith.mulf %2, %2 : vector<128x128xf32>
    %cst_6 = arith.constant dense<0.000000e+00> : vector<128xf32>
    %7 = vector.multi_reduction <add>, %6, %cst_6 [0] : vector<128x128xf32> to vector<128xf32>
    %8 = vector.shape_cast %7 : vector<128xf32> to vector<1x128xf32>
    %9 = tpu.iota {dimensions = array<i32: 0>} : vector<8x128xi32>
    %c0_i32 = arith.constant 0 : i32
    %10 = vector.broadcast %c0_i32 : i32 to vector<8x128xi32>
    %11 = arith.cmpi eq, %9, %10 : vector<8x128xi32>
    %c1_i32 = arith.constant 1 : i32
    %12 = vector.broadcast %c1_i32 : i32 to vector<8x128xi32>
    %13 = arith.cmpi eq, %9, %12 : vector<8x128xi32>
    %cst_7 = arith.constant 0.000000e+00 : f32
    %14 = vector.shape_cast %8 : vector<1x128xf32> to vector<1x128xf32>
    %15 = vector.broadcast %14 : vector<1x128xf32> to vector<8x128xf32>
    %16 = vector.broadcast %cst_7 : f32 to vector<8x128xf32>
    %17 = arith.select %13, %15, %16 : vector<8x128xi1>, vector<8x128xf32>
    %18 = vector.shape_cast %5 : vector<1x128xf32> to vector<1x128xf32>
    %19 = vector.broadcast %18 : vector<1x128xf32> to vector<8x128xf32>
    %20 = arith.select %11, %19, %17 : vector<8x128xi1>, vector<8x128xf32>
    %c0_8 = arith.constant 0 : index
    %c0_9 = arith.constant 0 : index
    %21 = vector.load %arg4[%c0_8, %c0_9] : memref<8x128xf32, #tpu.memory_space<vmem>>, vector<8x128xf32>
    tpu.vector_store %arg4[%c0_8, %c0_9], %20 {strides = array<i32>} : memref<8x128xf32, #tpu.memory_space<vmem>>, vector<8x128xf32>,
    return
  }
  func.func @transform_0(%arg0: i32) -> (i32, i32) {
    %c0_i32 = arith.constant 0 : i32
    %c0_i32_0 = arith.constant 0 : i32
    return %arg0, %c0_i32 : i32, i32
  }
  func.func @transform_1(%arg0: i32) -> (i32, i32) {
    %c0_i32 = arith.constant 0 : i32
    %c0_i32_0 = arith.constant 0 : i32
    %c0_i32_1 = arith.constant 0 : i32
    return %c0_i32, %c0_i32_0 : i32, i32
  }
  func.func @transform_2(%arg0: i32) -> (i32, i32) {
    %c0_i32 = arith.constant 0 : i32
    %c0_i32_0 = arith.constant 0 : i32
    return %arg0, %c0_i32 : i32, i32
  }
  func.func @transform_3(%arg0: i32) -> (i32, i32) {
    %c0_i32 = arith.constant 0 : i32
    %c0_i32_0 = arith.constant 0 : i32
    return %arg0, %c0_i32 : i32, i32
  }
}

</mosaic_0001>

<bundles_post_ra>
// kernel: tpu_custom_call.1
= control target key start
LH: loop header
LB: loop body
LE: loop exit
PB: predicated region body
PF: predicated region fallthrough
CT: control target
= control target key end

     0   :  { %9 = vsyncpa [#allocation3], 0  ;;  %s969_s0 = inlined_call_operand.vmem [shape: bf16[512,36], index: 0, kind: input, shape index: {}]   ;;  %s970_s1 = inlined_call_operand.vmem [shape: bf16[36,128], index: 1, kind: input, shape index: {}]   ;;  %s971_s2 = inlined_call_operand.hbm [shape: f32[512,128], index: 2, kind: output, shape index: {0}]   ;;  %s972_s3 = inlined_call_operand.hbm [shape: f32[32,128], index: 3, kind: output, shape index: {1}]  }
   0x1   :  { %11 = vsyncpa [#allocation3 + $0x1], 0 }
   0x2   :  { %12 = vsyncpa [#allocation5], 0 }
   0x3   :  { %14 = vsyncpa [#allocation5 + $0x1], 0  ;;  %s796_s12 = smov 0   ;;  %s798_s13 = smov 0  }
   0x4   :  { %s800_s14 = smov 0   ;;  %s802_s15 = smov 0  }
   0x5 LB: > { %s817_s16 = sadd.s32 4294967295, %s772_s15   ;;  %s549_s17 = sadd.s32 4294967294, %s772_s15   ;;  %s772_s15 = sphi %s802_s15, %s978_s15   ;;  %s768_s14 = sphi %s800_s14, %s977_s14   ;;  %s764_s13 = sphi %s798_s13, %s976_s13   ;;  %s760_s12 = sphi %s796_s12, %s975_s12  }
   0x6   : > { %s821_s18 = sadd.s32 1, %s772_s15   ;;  %s74_s19 = sadd.s32 1, %s768_s14 }
   0x7   : > { %s71_s20 = ssub.s32 %s772_s15, %s821_s18  ;;  %p84_p0 = scmp.ne.s32.totalorder %s768_s14, %s764_s13 }
   0x8   : > { %p72_p1 = scmp.eq.s32.totalorder %s71_s20, 0  ;;  %p85_p2 = scmp.eq.s32.totalorder %s817_s16, 3 }
   0x9   : > { %p90_p3 = scmp.ne.s32.totalorder %s764_s13, %s760_s12  ;;  %p91_p4 = scmp.eq.s32.totalorder %s549_s17, 3 }
   0xa   : > { %s832_s21 = scalar_select %p72_p1, %s768_s14, %s74_s19  }
   0xb   : > { %p834_p5 = por %p85_p2, %p84_p0  ;;  %p838_p6 = por %p91_p4, %p90_p3 }
   0xc   : > { %p552_p7 = scmp.ge.s32.totalorder %s772_s15, 1  ;;  %p147_p8 = scmp.lt.s32.totalorder %s772_s15, 5 }
   0xe   : > { %p148_p9 = pnand %p552_p7, %p147_p8 }
   0xf   : > { %s555_s26 = sshll.u32 (!%p148_p9), %s817_s16, 4  ;;  %s866_s8 = sand.u32 (!%p148_p9), 1, %s764_s13  }
  0x10   : > { %151 = sbr.rel (%p148_p9) target bundleno = 233 (0xe9), region = 28  ;;  %p177_p10 = scmp.lt.s32.totalorder (!%p148_p9), %s555_s26, 63 }
  0x11   : > { %s553_s9 = sshll.u32 (!%p148_p9), %s866_s8, 7  ;;  %s622_s11 = sshll.u32 (!%p148_p9), %s817_s16, 7 }
  0x12   : > { %s869_s10 = scalar_lea.vmem (!%p148_p9), [#allocation2], %s553_s9  ;;  %s436_s20 = scalar_lea.hbm (!%p148_p9), %s971_s2, %s622_s11 }
  0x13   : > { %s437_s24 = sshll.u32 (!%p148_p9), %s869_s10, 4  ;;  %s439_s25 = sshll.u32 (!%p148_p9), %s436_s20, 4  ;;  %s905_s24 = int_to_ptr.vmem [resolvable:$true] %s437_s24  ;;  %s440_s25 = int_to_ptr.hbm [resolvable:$true] %s439_s25 }
  0x14   : > { %s692_s27 = sshra.s32 (!%p148_p9), %s440_s25, 4  ;;  %s698_s4 = scalar_lea.hbm (!%p148_p9), %s971_s2, 512  ;;  %s693_s27 = int_to_ptr.hbm [resolvable:$true] %s692_s27 }
  0x15   : > { %v204_v0 = vld [vmem:[%s970_s1 + $0x10] sm:$0x3]  ;;  %vm285_vm0 = vcmask 1041408   ;;  %s980_s26 = smov (!%p177_p10, %s555_s26), 63  ;;  %v621_v4 = vld [vmem:[%s970_s1 + $0x8] sm:$0xff]  ;;  %v620_v5 = vld [vmem:[%s970_s1] sm:$0xff]  ;;  %p699_p0 = scmp.lt.s32.totalorder %s693_s27, %s971_s2 }
  0x16   : > { %v254_v1 = vunpack.c.l.b16 %v204_v0  ;;  %s556_s29 = sshll.u32 %s980_s26, 2  ;;  %vm260_vm1 = vcmask 293888   ;;  %s420_s26 = scalar_lea.sflag [#allocation3], %s866_s8 }
  0x17   : > { %s180_s7 = scalar_lea.vmem %s969_s0, %s556_s29  ;;  %s694_s28 = scalar_lea.hbm %s693_s27, 128 }
  0x18   : > { %v257_v2 = vpack.c.b16 %v254_v1, %v254_v1  ;;  %v612_v6 = vld [vmem:[%s180_s7] sm:$0xff]  ;;  %v614_v7 = vld [vmem:[%s180_s7 + $0x10] sm:$0xff]  ;;  %v613_v10 = vld [vmem:[%s180_s7 + $0x8] sm:$0xff]  ;;  %p695_p11 = scmp.ne.s32.totalorder %s693_s27, %s694_s28  ;;  %p700_p1 = scmp.lt.s32.totalorder %s698_s4, %s694_s28 }
  0x19   : > { %v616_v8 = vld [vmem:[%s180_s7 + $0x20] sm:$0xff]  ;;  %v618_v9 = vld [vmem:[%s180_s7 + $0x30] sm:$0xff]  ;;  %v615_v11 = vld [vmem:[%s180_s7 + $0x18] sm:$0xff] }
  0x1a   : > { %v287_v3 = vsel %vm285_vm0, %v257_v2, 0  ;;  %v617_v12 = vld [vmem:[%s180_s7 + $0x28] sm:$0xff]  ;;  %v619_v13 = vld [vmem:[%s180_s7 + $0x38] sm:$0xff]  ;;  %p696_p12 = pnand %p695_p11, %p834_p5  ;;  %p701_p2 = por %p700_p1, %p699_p0 }
  0x1b   : > { %294 = vmatpush.bf16.msra.mxu0 %v287_v3  ;;  %623 = vmatpush.bf16.msra.mxu1 %v287_v3 }
  0x1c   : > { %624 = vmatpush.bf16.msra.mxu2 %v287_v3  ;;  %625 = vmatpush.bf16.msra.mxu3 %v287_v3  ;;  %p697_p13 = pneg %p696_p12 }
  0x1e   : > { %p702_p3 = pnand %p701_p2, %p697_p13 }
  0x1f   : > { %295 = vmatpush.bf16.msra.mxu0 %v621_v4  ;;  %626 = vmatpush.bf16.msra.mxu1 %v621_v4 }
  0x20   : > { %627 = vmatpush.bf16.msra.mxu2 %v621_v4  ;;  %628 = vmatpush.bf16.msra.mxu3 %v621_v4 }
  0x23   : > { %296 = vmatpush.bf16.msra.mxu0 %v620_v5  ;;  %629 = vmatpush.bf16.msra.mxu1 %v620_v5 }
  0x24   : > { %630 = vmatpush.bf16.msra.mxu2 %v620_v5  ;;  %631 = vmatpush.bf16.msra.mxu3 %v620_v5 }
  0x26   : > { %597 = vmatmul.msk.bf16.vlgmr.msra.gmra.mxu0 %vm260_vm1, %v612_v6  ;;  %599 = vmatmul.msk.bf16.vlgmr.msra.gmra.mxu1 %vm260_vm1, %v614_v7 }
  0x27   : > { %601 = vmatmul.msk.bf16.vlgmr.msra.gmra.mxu2 %vm260_vm1, %v616_v8  ;;  %603 = vmatmul.msk.bf16.vlgmr.msra.gmra.mxu3 %vm260_vm1, %v618_v9 }
  0x36   : > { %598 = vmatmul.msk.bf16.gmra.mxu0 %vm260_vm1, %v613_v10  ;;  %600 = vmatmul.msk.bf16.gmra.mxu1 %vm260_vm1, %v615_v11 }
  0x37   : > { %602 = vmatmul.msk.bf16.gmra.mxu2 %vm260_vm1, %v617_v12  ;;  %604 = vmatmul.msk.bf16.gmra.mxu3 %vm260_vm1, %v619_v13 }
  0xa3   : > { %v298_v14 = vpop.f32.mrf.mxu0  ;;  %v308_v15 = vpop.f32.mrf.mxu1 }
  0xa4   : > { %338 = vst [vmem:[%s869_s10] sm:$0xff] %v298_v14  ;;  %v375_v25 = vmul.f32 %v298_v14, %v298_v14  ;;  %v379_v37 = vmul.f32 %v308_v15, %v308_v15 }
  0xa5   : > { %342 = vst [vmem:[%s869_s10 + $0x20] sm:$0xff] %v308_v15 }
  0xaa   : > { %v873_v16 = vpop.f32.mrf.mxu2  ;;  %v875_v17 = vpop.f32.mrf.mxu3 }
  0xab   : > { %v300_v18 = vpop.f32.mrf.mxu0  ;;  %v310_v19 = vpop.f32.mrf.mxu1  ;;  %346 = vst [vmem:[%s869_s10 + $0x40] sm:$0xff] %v873_v16 }
  0xac   : > { %339 = vst [vmem:[%s869_s10 + $0x8] sm:$0xff] %v300_v18  ;;  %v376_v24 = vmul.f32 %v300_v18, %v300_v18  ;;  %v354_v26 = vadd.f32 %v300_v18, %v298_v14  ;;  %v380_v40 = vmul.f32 %v310_v19, %v310_v19 }
  0xad   : > { %343 = vst [vmem:[%s869_s10 + $0x28] sm:$0xff] %v310_v19 }
  0xae   : > { %350 = vst [vmem:[%s869_s10 + $0x60] sm:$0xff] %v875_v17  ;;  %v391_v28 = vadd.f32 %v376_v24, %v375_v25 }
  0xb2   : > { %v883_v20 = vpop.f32.mrf.mxu2  ;;  %v885_v21 = vpop.f32.mrf.mxu3 }
  0xb3   : > { %v303_v22 = vpop.f32.mrf.mxu0  ;;  %v313_v23 = vpop.f32.mrf.mxu1  ;;  %347 = vst [vmem:[%s869_s10 + $0x48] sm:$0xff] %v883_v20 }
  0xb4   : > { %340 = vst [vmem:[%s869_s10 + $0x10] sm:$0xff] %v303_v22  ;;  %v377_v27 = vmul.f32 %v303_v22, %v303_v22  ;;  %v355_v29 = vadd.f32 %v354_v26, %v303_v22  ;;  %v381_v43 = vmul.f32 %v313_v23, %v313_v23 }
  0xb5   : > { %344 = vst [vmem:[%s869_s10 + $0x30] sm:$0xff] %v313_v23 }
  0xb6   : > { %351 = vst [vmem:[%s869_s10 + $0x68] sm:$0xff] %v885_v21  ;;  %v392_v34 = vadd.f32 %v391_v28, %v377_v27 }
  0xba   : > { %v323_v30 = vpop.f32.mrf.mxu2  ;;  %v894_v31 = vpop.f32.mrf.mxu3 }
  0xbb   : > { %v305_v32 = vpop.f32.mrf.mxu0  ;;  %v315_v33 = vpop.f32.mrf.mxu1  ;;  %348 = vst [vmem:[%s869_s10 + $0x50] sm:$0xff] %v323_v30 }
  0xbc   : > { %341 = vst [vmem:[%s869_s10 + $0x18] sm:$0xff] %v305_v32  ;;  %v356_v35 = vadd.f32 %v355_v29, %v305_v32  ;;  %v378_v36 = vmul.f32 %v305_v32, %v305_v32  ;;  %v382_v49 = vmul.f32 %v315_v33, %v315_v33 }
  0xbd   : > { %345 = vst [vmem:[%s869_s10 + $0x38] sm:$0xff] %v315_v33 }
  0xbe   : > { %v357_v38 = vadd.f32 %v356_v35, %v308_v15  ;;  %v393_v39 = vadd.f32 %v392_v34, %v378_v36  ;;  %352 = vst [vmem:[%s869_s10 + $0x70] sm:$0xff] %v894_v31 }
  0xc0   : > { %v394_v41 = vadd.f32 %v393_v39, %v379_v37  ;;  %v358_v42 = vadd.f32 %v357_v38, %v310_v19 }
  0xc2   : > { %v359_v44 = vadd.f32 %v358_v42, %v313_v23  ;;  %v395_v45 = vadd.f32 %v394_v41, %v380_v40  ;;  %v325_v46 = vpop.f32.mrf.mxu2  ;;  %v335_v47 = vpop.f32.mrf.mxu3 }
  0xc3   : > { %349 = vst [vmem:[%s869_s10 + $0x58] sm:$0xff] %v325_v46 }
  0xc4   : > { %v360_v48 = vadd.f32 %v359_v44, %v315_v33  ;;  %v396_v50 = vadd.f32 %v395_v45, %v381_v43  ;;  %353 = vst [vmem:[%s869_s10 + $0x78] sm:$0xff] %v335_v47 }
  0xc5   : > { %705 = shalt.err (!%p702_p3)
}
  0xc6   : > { %s774_s7 = smov 128   ;;  %s775_s9 = smov 8   ;;  %v383_v51 = vmul.f32 %v873_v16, %v873_v16  ;;  %v361_v52 = vadd.f32 %v360_v48, %v873_v16  ;;  %v397_v53 = vadd.f32 %v396_v50, %v382_v49  ;;  %v384_v54 = vmul.f32 %v883_v20, %v883_v20 }
  0xc7   : > { %632 = dma.vmem_to_hbm [thread:$0]  (%p834_p5), %s905_s24, 2048, %s440_s25, %s420_s26, %s774_s7, %s774_s7, %s775_s9   ;;  %v385_v58 = vmul.f32 %v323_v30, %v323_v30  ;;  %v386_v62 = vmul.f32 %v325_v46, %v325_v46  ;;  %v387_v63 = vmul.f32 %v875_v17, %v875_v17  ;;  %v388_v2 = vmul.f32 %v885_v21, %v885_v21 }
  0xc8   : > { %v398_v55 = vadd.f32 %v397_v53, %v383_v51  ;;  %v362_v56 = vadd.f32 %v361_v52, %v883_v20  ;;  %v389_v6 = vmul.f32 %v894_v31, %v894_v31  ;;  %v390_v10 = vmul.f32 %v335_v47, %v335_v47  ;;  %s554_s10 = sshll.u32 %s866_s8, 3  ;;  %s609_s11 = sshll.u32 %s817_s16, 3 }
  0xc9   : > { %v412_v15 = vlaneseq  ;;  %s452_s20 = scalar_lea.hbm %s972_s3, %s609_s11  ;;  %s175_s24 = scalar_lea.vmem [#allocation4], %s554_s10 }
  0xca   : > { %v363_v57 = vadd.f32 %v362_v56, %v323_v30  ;;  %v399_v59 = vadd.f32 %v398_v55, %v384_v54  ;;  %s454_s25 = sshll.u32 %s175_s24, 4  ;;  %s456_s26 = sshll.u32 %s452_s20, 4  ;;  %s455_s25 = int_to_ptr.vmem [resolvable:$true] %s454_s25  ;;  %s457_s26 = int_to_ptr.hbm [resolvable:$true] %s456_s26 }
  0xcb   : > { %v413_v20 = vshrl.u32 %v412_v15, 7  ;;  %s425_s16 = scalar_lea.sflag [#allocation5], %s866_s8  ;;  %s720_s27 = sshra.s32 %s457_s26, 4  ;;  %s721_s27 = int_to_ptr.hbm [resolvable:$true] %s720_s27 }
  0xcc   : > { %v400_v60 = vadd.f32 %v399_v59, %v385_v58  ;;  %v364_v61 = vadd.f32 %v363_v57, %v325_v46  ;;  %s722_s28 = scalar_lea.hbm %s721_s27, 8  ;;  %s726_s4 = scalar_lea.hbm %s972_s3, 32 }
  0xcd   : > { %vm415_vm2 = vcmp.eq.s32.totalorder %v413_v20, 1  ;;  %vm414_vm3 = vcmp.eq.s32.totalorder %v413_v20, 0  ;;  %p723_p4 = scmp.ne.s32.totalorder %s721_s27, %s722_s28  ;;  %p727_p9 = scmp.lt.s32.totalorder %s721_s27, %s972_s3 }
  0xce   : > { %v365_v0 = vadd.f32 %v364_v61, %v875_v17  ;;  %v401_v1 = vadd.f32 %v400_v60, %v386_v62  ;;  %p728_p10 = scmp.lt.s32.totalorder %s726_s4, %s722_s28 }
  0xcf   : > { %p724_p7 = pnand %p723_p4, %p834_p5 }
  0xd0   : > { %v402_v3 = vadd.f32 %v401_v1, %v387_v63  ;;  %v366_v4 = vadd.f32 %v365_v0, %v885_v21  ;;  %p729_p11 = por %p728_p10, %p727_p9 }
  0xd1   : > { %p725_p8 = pneg %p724_p7 }
  0xd2   : > { %v367_v5 = vadd.f32 %v366_v4, %v894_v31  ;;  %v403_v7 = vadd.f32 %v402_v3, %v388_v2 }
  0xd3   : > { %p730_p12 = pnand %p729_p11, %p725_p8 }
  0xd4   : > { %v404_v8 = vadd.f32 %v403_v7, %v389_v6  ;;  %v368_v9 = vadd.f32 %v367_v5, %v335_v47 }
  0xd6   : > { %v369_v11 = vrot.slane %v368_v9, 4  ;;  %v405_v12 = vadd.f32 %v404_v8, %v390_v10 }
  0xd8   : > { %v370_v13 = vadd.f32 %v369_v11, %v368_v9  ;;  %v406_v14 = vrot.slane %v405_v12, 4 }
  0xda   : > { %v371_v16 = vrot.slane %v370_v13, 2  ;;  %v407_v17 = vadd.f32 %v406_v14, %v405_v12 }
  0xdc   : > { %v372_v18 = vadd.f32 %v371_v16, %v370_v13  ;;  %v408_v19 = vrot.slane %v407_v17, 2 }
  0xde   : > { %v409_v21 = vadd.f32 %v408_v19, %v407_v17  ;;  %v373_v22 = vrot.slane %v372_v18, 1 }
  0xe0   : > { %v410_v23 = vrot.slane %v409_v21, 1  ;;  %v374_v25 = vadd.f32 %v373_v22, %v372_v18 }
  0xe2   : > { %v411_v24 = vadd.f32 %v410_v23, %v409_v21 }
  0xe4   : > { %v416_v26 = vsel %vm415_vm2, %v411_v24, 0.0 }
  0xe5   : > { %v417_v27 = vsel %vm414_vm3, %v374_v25, %v416_v26 }
  0xe6   : > { %418 = vst [vmem:[%s175_s24] sm:$0xff] %v417_v27 }
  0xe7   : > { %733 = shalt.err (!%p730_p12)
}
  0xe8   : > { %633 = dma.vmem_to_hbm [thread:$0]  (%p834_p5), %s455_s25, 128, %s457_s26, %s425_s16  }
  0xe9 PF: > { %p643_p13 = scmp.ge.s32.totalorder %s772_s15, 2  ;;  %s468_s8 = sand.u32 1, %s760_s12  }
  0xea   : > { %s469_s7 = scalar_lea.sflag [#allocation3], %s468_s8 }
  0xeb   : > { %p637_p0 = pnand %p643_p13, %p838_p6 }
  0xed   : > { %p638_p1 = pneg %p637_p0 }
  0xef   : > { %751 = dma.done.wait (%p638_p1), %s469_s7, 2048  }
  0xf0   : > { %753 = vsyncadd (%p638_p1), %s469_s7, 4294965248  ;;  %s479_s9 = scalar_lea.sflag [#allocation5], %s468_s8 }
  0xf1   : > { %755 = dma.done.wait (%p638_p1), %s479_s9, 128  }
  0xf2   : > { %757 = vsyncadd (%p638_p1), %s479_s9, 4294967168  ;;  %p17_p5 = scmp.ge.s32.totalorder %s821_s18, 6   ;;  %s975_s12 = smov %s764_s13 }
  0xf3   : > { %s976_s13 = smov %s768_s14  ;;  %s977_s14 = smov %s832_s21 }
  0xf4   : > { %s978_s15 = smov %s821_s18  ;;  %19 = sbr.rel (!%p17_p5) target bundleno = 5 (0x5), region = 80 }
  0xf9   :  { %485 = vsyncpa [#allocation3], 1 }
  0xfa   :  { %487 = vsyncpa [#allocation3 + $0x1], 1 }
  0xfb   :  { %488 = vsyncpa [#allocation5], 1 }
  0xfc   :  { %490 = vsyncpa [#allocation5 + $0x1], 1 }

</bundles_post_ra>
